<compile_context>
chip_gen: v7x
topology: tpu7x:2x2x1
jax: 0.10.0
libtpu: 0.0.40
codegen_flags: <defaults>
</compile_context>

<pallas_src>
import math
import functools

import jax
import jax.numpy as jnp
from jax import lax
from jax.experimental import pallas as pl
from jax.experimental.pallas import tpu as pltpu


# ---------------------------------------------------------------------------
# per-generation budgets
# ---------------------------------------------------------------------------
def _tpu_budgets():
    vmem_cap = 64 * 1024 * 1024          # conservative default (v7x-class)
    try:
        info = pltpu.get_tpu_info()
        vmem_cap = int(getattr(info, "vmem_capacity_bytes", vmem_cap))
    except Exception:
        pass
    if vmem_cap >= 96 * 1024 * 1024:     # v5e / v6e: 128 MiB physical VMEM
        return dict(vmem_limit=100 * 1024 * 1024, tm=512, tn=512, tk=512,
                    tq=256, tkv=256)
    # v7x-class (64 MiB per TensorCore) or unknown: stay conservative
    return dict(vmem_limit=48 * 1024 * 1024, tm=256, tn=256, tk=512,
                tq=128, tkv=256)


_CFG = _tpu_budgets()


def _pick_tile(dim, target, align):
    """Largest t <= target with dim % t == 0 and t % align == 0; None if none."""
    if dim <= target:
        return dim
    for t in range(target, align - 1, -1):
        if dim % t == 0 and t % align == 0:
            return t
    return None


# ---------------------------------------------------------------------------
# Tiled matmul (+bias, +optional exact-GELU epilogue).  Weights are bf16.
# ---------------------------------------------------------------------------
def _matmul_kernel(x_ref, w_ref, b_ref, o_ref, acc_ref, *, act):
    k = pl.program_id(2)

    @pl.when(k == 0)
    def _():
        acc_ref[...] = jnp.zeros_like(acc_ref)

    acc_ref[...] += jnp.dot(
        x_ref[...].astype(jnp.bfloat16), w_ref[...],
        preferred_element_type=jnp.float32,
    )

    @pl.when(k == pl.num_programs(2) - 1)
    def _():
        y = acc_ref[...] + b_ref[...]
        if act == "gelu":  # exact (erf) GELU, matching torch.nn.GELU default
            y = 0.5 * y * (1.0 + lax.erf(y * (1.0 / math.sqrt(2.0))))
        o_ref[...] = y.astype(o_ref.dtype)


def linear(x, w, b, act=None):
    cfg = _CFG
    M0, K = x.shape
    N = w.shape[1]

    tm = _pick_tile(M0, cfg["tm"], 8)
    if tm is None:                       # awkward M: pad rows to the tile target
        tm = cfg["tm"]
        x = jnp.pad(x, ((0, (-M0) % tm), (0, 0)))
    M = x.shape[0]

    # weight-resident policy: DMA the full bf16 weight once per call when it fits.
    resident_bytes = 2 * (K * N * 2) + 2 * (tm * K * 4) + 3 * (tm * N * 4) + 4 * N
    if resident_bytes <= cfg["vmem_limit"] * 7 // 10:
        tn, tk = N, K
    else:
        # weight dims are static model dims (multiples of 128 for real BERT);
        # full-dim fallback only triggers for odd configs.
        tn = _pick_tile(N, cfg["tn"], 128) or N
        tk = _pick_tile(K, cfg["tk"], 128) or K

    grid = (M // tm, N // tn, K // tk)
    ce = pl.CostEstimate(
        flops=2 * M * N * K,
        transcendentals=(M * N if act == "gelu" else 0),
        bytes_accessed=4 * M * K + 2 * K * N + 4 * M * N + 4 * N,
    )
    out = pl.pallas_call(
        functools.partial(_matmul_kernel, act=act),
        out_shape=jax.ShapeDtypeStruct((M, N), jnp.float32),
        grid=grid,
        in_specs=[
            pl.BlockSpec((tm, tk), lambda i, j, k: (i, k)),
            pl.BlockSpec((tk, tn), lambda i, j, k: (k, j)),
            pl.BlockSpec((1, tn), lambda i, j, k: (0, j)),
        ],
        out_specs=pl.BlockSpec((tm, tn), lambda i, j, k: (i, j)),
        scratch_shapes=[pltpu.VMEM((tm, tn), jnp.float32)],
        compiler_params=pltpu.CompilerParams(
            dimension_semantics=("parallel", "parallel", "arbitrary"),
            vmem_limit_bytes=cfg["vmem_limit"],
        ),
        cost_estimate=ce,
    )(x, w, b.reshape(1, N))
    return out[:M0] if M != M0 else out


# ---------------------------------------------------------------------------
# Tiled matmul with fused bias + residual-add + LayerNorm epilogue (tn == N)
# ---------------------------------------------------------------------------
def _matmul_addln_kernel(x_ref, w_ref, b_ref, r_ref, g_ref, bb_ref, o_ref,
                         acc_ref, *, eps):
    k = pl.program_id(1)

    @pl.when(k == 0)
    def _():
        acc_ref[...] = jnp.zeros_like(acc_ref)

    acc_ref[...] += jnp.dot(
        x_ref[...].astype(jnp.bfloat16), w_ref[...],
        preferred_element_type=jnp.float32,
    )

    @pl.when(k == pl.num_programs(1) - 1)
    def _():
        y = acc_ref[...] + b_ref[...] + r_ref[...]
        mean = jnp.mean(y, axis=-1, keepdims=True)
        var = jnp.mean(jnp.square(y - mean), axis=-1, keepdims=True)  # biased (torch LN)
        yn = (y - mean) * lax.rsqrt(var + eps)
        o_ref[...] = (yn * g_ref[...] + bb_ref[...]).astype(o_ref.dtype)


def linear_add_ln(x, w, b, res, gamma, beta, eps=1e-12):
    cfg = _CFG
    M0, K = x.shape
    N = w.shape[1]
    budget = cfg["vmem_limit"] * 7 // 10

    tk = _pick_tile(K, cfg["tk"], 128) or K

    # v7x re-budget: shrink the row tile until the full-width panels fit VMEM.
    def _est(tm_):
        return (2 * tm_ * tk * 4 + 2 * tk * N * 2 + 2 * tm_ * N * 4
                + 2 * tm_ * N * 4 + tm_ * N * 4 + 12 * N)

    tm_target = cfg["tm"]
    while tm_target > 8 and _est(tm_target) > budget:
        tm_target //= 2

    tm = _pick_tile(M0, tm_target, 8)
    if tm is None:
        tm = tm_target
        pad = (-M0) % tm
        x = jnp.pad(x, ((0, pad), (0, 0)))
        res = jnp.pad(res, ((0, pad), (0, 0)))
    M = x.shape[0]

    grid = (M // tm, K // tk)
    ce = pl.CostEstimate(
        flops=2 * M * N * K,
        transcendentals=0,
        bytes_accessed=4 * M * K + 2 * K * N + 8 * M * N + 12 * N,
    )
    out = pl.pallas_call(
        functools.partial(_matmul_addln_kernel, eps=eps),
        out_shape=jax.ShapeDtypeStruct((M, N), jnp.float32),
        grid=grid,
        in_specs=[
            pl.BlockSpec((tm, tk), lambda i, k: (i, k)),
            pl.BlockSpec((tk, N), lambda i, k: (k, 0)),
            pl.BlockSpec((1, N), lambda i, k: (0, 0)),
            pl.BlockSpec((tm, N), lambda i, k: (i, 0)),
            pl.BlockSpec((1, N), lambda i, k: (0, 0)),
            pl.BlockSpec((1, N), lambda i, k: (0, 0)),
        ],
        out_specs=pl.BlockSpec((tm, N), lambda i, k: (i, 0)),
        scratch_shapes=[pltpu.VMEM((tm, N), jnp.float32)],
        compiler_params=pltpu.CompilerParams(
            dimension_semantics=("parallel", "arbitrary"),
            vmem_limit_bytes=cfg["vmem_limit"],
        ),
        cost_estimate=ce,
    )(x, w, b.reshape(1, N), res, gamma.reshape(1, N), beta.reshape(1, N))
    return out[:M0] if M != M0 else out


# ---------------------------------------------------------------------------
# Standalone tiled residual-add + LayerNorm (embedding branch)
# ---------------------------------------------------------------------------
def _add_ln_kernel(x_ref, r_ref, g_ref, b_ref, o_ref, *, eps):
    x = x_ref[...] + r_ref[...]
    mean = jnp.mean(x, axis=-1, keepdims=True)
    var = jnp.mean(jnp.square(x - mean), axis=-1, keepdims=True)
    y = (x - mean) * lax.rsqrt(var + eps)
    o_ref[...] = (y * g_ref[...] + b_ref[...]).astype(o_ref.dtype)


def add_layernorm(x, res, gamma, beta, eps=1e-12):
    cfg = _CFG
    M0, H = x.shape
    tm = _pick_tile(M0, max(cfg["tm"], 512), 8)
    if tm is None:
        tm = max(cfg["tm"], 512)
        pad = (-M0) % tm
        x = jnp.pad(x, ((0, pad), (0, 0)))
        res = jnp.pad(res, ((0, pad), (0, 0)))
    M = x.shape[0]
    out = pl.pallas_call(
        functools.partial(_add_ln_kernel, eps=eps),
        out_shape=jax.ShapeDtypeStruct((M, H), jnp.float32),
        grid=(M // tm,),
        in_specs=[
            pl.BlockSpec((tm, H), lambda i: (i, 0)),
            pl.BlockSpec((tm, H), lambda i: (i, 0)),
            pl.BlockSpec((1, H), lambda i: (0, 0)),
            pl.BlockSpec((1, H), lambda i: (0, 0)),
        ],
        out_specs=pl.BlockSpec((tm, H), lambda i: (i, 0)),
        compiler_params=pltpu.CompilerParams(
            dimension_semantics=("parallel",),
            vmem_limit_bytes=cfg["vmem_limit"],
        ),
    )(x, res, gamma.reshape(1, H), beta.reshape(1, H))
    return out[:M0] if M != M0 else out


# ---------------------------------------------------------------------------
# Fused QKV projection: x (M, H) @ w3 (3, H, H) + b3 -> (3, M, H).
# The q/k/v split is done purely by the out BlockSpec (no HBM transpose).
# ---------------------------------------------------------------------------
def _qkv_kernel(x_ref, w_ref, b_ref, o_ref, acc_ref):
    k = pl.program_id(1)

    @pl.when(k == 0)
    def _():
        acc_ref[...] = jnp.zeros_like(acc_ref)

    xb = x_ref[...].astype(jnp.bfloat16)
    for p in range(3):  # q / k / v planes share the x tile (x read once)
        acc_ref[p] += jnp.dot(xb, w_ref[p], preferred_element_type=jnp.float32)

    @pl.when(k == pl.num_programs(1) - 1)
    def _():
        o_ref[...] = (acc_ref[...] + b_ref[...]).astype(o_ref.dtype)


def qkv_projection(x, w3, b3):
    cfg = _CFG
    M, K = x.shape
    H = w3.shape[2]
    tm = _pick_tile(M, cfg["tm"], 8) or M
    resident = 2 * (3 * K * H * 2) + 2 * tm * K * 4 + 3 * (3 * tm * H * 4)
    if resident <= cfg["vmem_limit"] * 7 // 10:
        tk = K
    else:
        tk = _pick_tile(K, cfg["tk"], 128) or K
    grid = (M // tm, K // tk)
    ce = pl.CostEstimate(
        flops=2 * M * 3 * H * K,
        transcendentals=0,
        bytes_accessed=4 * M * K + 2 * 3 * K * H + 4 * 3 * M * H,
    )
    return pl.pallas_call(
        _qkv_kernel,
        out_shape=jax.ShapeDtypeStruct((3, M, H), jnp.float32),
        grid=grid,
        in_specs=[
            pl.BlockSpec((tm, tk), lambda i, k: (i, k)),
            pl.BlockSpec((3, tk, H), lambda i, k: (0, k, 0)),
            pl.BlockSpec((3, 1, H), lambda i, k: (0, 0, 0)),
        ],
        out_specs=pl.BlockSpec((3, tm, H), lambda i, k: (0, i, 0)),
        scratch_shapes=[pltpu.VMEM((3, tm, H), jnp.float32)],
        compiler_params=pltpu.CompilerParams(
            dimension_semantics=("parallel", "arbitrary"),
            vmem_limit_bytes=cfg["vmem_limit"],
        ),
        cost_estimate=ce,
    )(x, w3, b3)


# ---------------------------------------------------------------------------
# Flash attention over lane-dense (tq, H)/(tkv, H) blocks.  Heads are split
# in-register (static lane slices), online softmax over kv tiles, output is a
# lane-dense (B, S, H) context (no head-merge transpose in HBM).
# ---------------------------------------------------------------------------
def _flash_kernel(q_ref, k_ref, v_ref, bias_ref, o_ref, m_sc, l_sc, acc_sc,
                  *, n_heads, dh, scale):
    ki = pl.program_id(2)

    @pl.when(ki == 0)
    def _():
        m_sc[...] = jnp.full_like(m_sc, -jnp.inf)
        l_sc[...] = jnp.zeros_like(l_sc)
        acc_sc[...] = jnp.zeros_like(acc_sc)

    q2 = q_ref[0, 0] * scale                       # (tq, H)  scale folded into q (f32)
    k2 = k_ref[0, 0].astype(jnp.bfloat16)          # (tkv, H)
    v2 = v_ref[0, 0].astype(jnp.bfloat16)          # (tkv, H)
    bias = bias_ref[0]                             # (1, tkv) additive mask bias

    for h in range(n_heads):
        sl = slice(h * dh, (h + 1) * dh)
        qh = q2[:, sl].astype(jnp.bfloat16)        # (tq, dh)
        s = lax.dot_general(qh, k2[:, sl], (((1,), (1,)), ((), ())),
                            preferred_element_type=jnp.float32)   # (tq, tkv)
        s = s + bias

        m_prev = m_sc[h]                           # (tq, 1)
        m_new = jnp.maximum(m_prev, s.max(axis=-1, keepdims=True))
        alpha = jnp.exp(m_prev - m_new)
        p = jnp.exp(s - m_new)
        l_sc[h] = alpha * l_sc[h] + p.sum(axis=-1, keepdims=True)
        acc_sc[h] = alpha * acc_sc[h] + jnp.dot(
            p.astype(jnp.bfloat16), v2[:, sl], preferred_element_type=jnp.float32)
        m_sc[h] = m_new

    @pl.when(ki == pl.num_programs(2) - 1)
    def _():
        heads = [acc_sc[h] * pl.reciprocal(l_sc[h], approx=True)
                 for h in range(n_heads)]
        o_ref[0] = jnp.concatenate(heads, axis=-1).astype(o_ref.dtype)


def flash_attention(qkv, mask_bias, n_heads):
    """qkv: (3, B, S, H) f32; mask_bias: (B, 1, S) f32; returns (B, S, H) f32."""
    cfg = _CFG
    _, B, S, H = qkv.shape
    dh = H // n_heads
    scale = 1.0 / math.sqrt(dh)
    tq = _pick_tile(S, cfg["tq"], 8) or S
    tkv = _pick_tile(S, cfg["tkv"], 128) or S
    grid = (B, S // tq, S // tkv)
    kern = functools.partial(_flash_kernel, n_heads=n_heads, dh=dh, scale=scale)
    return pl.pallas_call(
        kern,
        out_shape=jax.ShapeDtypeStruct((B, S, H), jnp.float32),
        grid=grid,
        in_specs=[
            pl.BlockSpec((1, 1, tq, H), lambda b, qi, ki: (0, b, qi, 0)),
            pl.BlockSpec((1, 1, tkv, H), lambda b, qi, ki: (1, b, ki, 0)),
            pl.BlockSpec((1, 1, tkv, H), lambda b, qi, ki: (2, b, ki, 0)),
            pl.BlockSpec((1, 1, tkv), lambda b, qi, ki: (b, 0, ki)),
        ],
        out_specs=pl.BlockSpec((1, tq, H), lambda b, qi, ki: (b, qi, 0)),
        scratch_shapes=[
            pltpu.VMEM((n_heads, tq, 1), jnp.float32),
            pltpu.VMEM((n_heads, tq, 1), jnp.float32),
            pltpu.VMEM((n_heads, tq, dh), jnp.float32),
        ],
        compiler_params=pltpu.CompilerParams(
            dimension_semantics=("parallel", "parallel", "arbitrary"),
            vmem_limit_bytes=cfg["vmem_limit"],
        ),
    )(qkv, qkv, qkv, mask_bias)


# ---------------------------------------------------------------------------
# BERT built from the kernels above (gathers / free reshapes in plain JAX)
# ---------------------------------------------------------------------------
def sinusoidal_pos(seq_len, hidden):
    pos = jnp.arange(seq_len, dtype=jnp.float32)[:, None]
    i = jnp.arange(hidden // 2, dtype=jnp.float32)[None, :]
    angle = pos / jnp.power(10000.0, 2.0 * i / hidden)
    pe = jnp.zeros((seq_len, hidden), jnp.float32)
    pe = pe.at[:, 0::2].set(jnp.sin(angle))
    pe = pe.at[:, 1::2].set(jnp.cos(angle))
    return pe


def bert_embedding(ids, params):
    B, S = ids.shape
    tok = jnp.take(params["tok_emb"], ids, axis=0)          # gather glue (B, S, H)
    H = tok.shape[-1]
    pos = jnp.broadcast_to(params["pos_enc"][None, :S, :], tok.shape)
    out = add_layernorm(tok.reshape(B * S, H), pos.reshape(B * S, H),
                        params["emb_ln_g"], params["emb_ln_b"])
    # TODO(synk): dropout omitted (inference/eval semantics; stochastic op).
    return out.reshape(B, S, H)


def encoder_layer(x, mask_bias, p, n_heads):
    B, S, H = x.shape
    xf = x.reshape(B * S, H)

    qkv = qkv_projection(xf, p["wqkv"], p["bqkv"])           # (3, B*S, H)
    qkv = qkv.reshape(3, B, S, H)                            # free (metadata) reshape
    ctx = flash_attention(qkv, mask_bias, n_heads)           # (B, S, H), lane-dense

    # attention output projection with fused residual-add + LayerNorm (post-LN)
    x1 = linear_add_ln(ctx.reshape(B * S, H), p["wo"], p["bo"], xf,
                       p["ln1_g"], p["ln1_b"])
    # FFN: up-projection with fused GELU, down-projection with fused add+LN
    h = linear(x1, p["w1"], p["b1"], act="gelu")
    x2 = linear_add_ln(h, p["w2"], p["b2"], x1, p["ln2_g"], p["ln2_b"])
    return x2.reshape(B, S, H)


def bert_forward(ids, params, n_heads):
    B, S = ids.shape
    # padding mask: attend only to positions with token id > 0 (BERT convention)
    mask_bias = jnp.where(ids > 0, 0.0, -1e9).astype(jnp.float32).reshape(B, 1, S)
    x = bert_embedding(ids, params)
    for p in params["layers"]:
        x = encoder_layer(x, mask_bias, p, n_heads)
    return x


def con_atom_forward(seq, seq_mask, params, n_heads):
    out_mask = bert_forward(seq_mask, params, n_heads)   # self.encoder(seq_mask)
    out = bert_embedding(seq, params)                    # self.encoder.embedding(seq)
    return out, out_mask


# ---------------------------------------------------------------------------
# Deterministic parameter init (weights stored bf16; QKV as (3, H, H) planes)
# ---------------------------------------------------------------------------
def init_params(key, vocab_size, hidden, n_layers, ffn, seq_len):
    keys = jax.random.split(key, 1 + n_layers)

    def dense(k, fan_in, fan_out):
        w = (jax.random.normal(k, (fan_in, fan_out), jnp.float32) * 0.02
             ).astype(jnp.bfloat16)
        return w, jnp.zeros((fan_out,), jnp.float32)

    params = {
        "tok_emb": jax.random.normal(keys[0], (vocab_size, hidden), jnp.float32) * 0.02,
        "pos_enc": sinusoidal_pos(seq_len, hidden),
        "emb_ln_g": jnp.ones((hidden,), jnp.float32),
        "emb_ln_b": jnp.zeros((hidden,), jnp.float32),
        "layers": [],
    }
    for li in range(n_layers):
        ks = jax.random.split(keys[1 + li], 4)
        wqkv = (jax.random.normal(ks[0], (3, hidden, hidden), jnp.float32) * 0.02
                ).astype(jnp.bfloat16)                       # q/k/v planes, (head, dh) column order
        bqkv = jnp.zeros((3, 1, hidden), jnp.float32)
        wo, bo = dense(ks[1], hidden, hidden)
        w1, b1 = dense(ks[2], hidden, ffn)
        w2, b2 = dense(ks[3], ffn, hidden)
        params["layers"].append({
            "wqkv": wqkv, "bqkv": bqkv,
            "wo": wo, "bo": bo, "w1": w1, "b1": b1, "w2": w2, "b2": b2,
            "ln1_g": jnp.ones((hidden,), jnp.float32), "ln1_b": jnp.zeros((hidden,), jnp.float32),
            "ln2_g": jnp.ones((hidden,), jnp.float32), "ln2_b": jnp.zeros((hidden,), jnp.float32),
        })
    return params


if __name__ == "__main__":
    # small config consistent with Con_atom(vocab_size, hidden, n_layers, attn_heads, ...)
    vocab_size, hidden, n_layers, attn_heads, seq_len = 32, 32, 2, 4, 8
    batch = 2

    key = jax.random.PRNGKey(0)
    kp, ks1, ks2 = jax.random.split(key, 3)
    params = init_params(kp, vocab_size, hidden, n_layers, 4 * hidden, seq_len)

    seq = jax.random.randint(ks1, (batch, seq_len), 1, vocab_size)       # token ids
    seq_mask = jax.random.randint(ks2, (batch, seq_len), 0, vocab_size)  # token ids (0 = pad)

    out, out_mask = con_atom_forward(seq, seq_mask, params, attn_heads)
    jax.block_until_ready((out, out_mask))

    assert out.shape == (batch, seq_len, hidden) and out.dtype == jnp.float32
    assert out_mask.shape == (batch, seq_len, hidden) and out_mask.dtype == jnp.float32
    print("KERNEL_OK")
</pallas_src>

<mosaic_0001>
module attributes {stable_mosaic.version = 11 : i64} {
  func.func @_add_ln_kernel(%arg0: i32, %arg1: memref<16x32xf32, #tpu.memory_space<vmem>>, %arg2: memref<16x32xf32, #tpu.memory_space<vmem>>, %arg3: memref<1x32xf32, #tpu.memory_space<vmem>>, %arg4: memref<1x32xf32, #tpu.memory_space<vmem>>, %arg5: memref<16x32xf32, #tpu.memory_space<vmem>>) attributes {dimension_semantics = [#tpu.dimension_semantics<parallel>], iteration_bounds = array<i64: 1>, scalar_prefetch = 0 : i64, scratch_operands = 0 : i64, tpu.core_type = #tpu.core_type<tc>, window_params = [{transform_indices = @transform_0, window_bounds = array<i64: 16, 32>}, {transform_indices = @transform_1, window_bounds = array<i64: 16, 32>}, {pipeline_mode = #tpu.pipeline_mode<synchronous>, transform_indices = @transform_2, window_bounds = array<i64: 1, 32>}, {pipeline_mode = #tpu.pipeline_mode<synchronous>, transform_indices = @transform_3, window_bounds = array<i64: 1, 32>}, {transform_indices = @transform_4, window_bounds = array<i64: 16, 32>}]} {
    %c0 = arith.constant 0 : index
    %c0_0 = arith.constant 0 : index
    %0 = vector.load %arg1[%c0, %c0_0] : memref<16x32xf32, #tpu.memory_space<vmem>>, vector<16x32xf32>
    %c0_1 = arith.constant 0 : index
    %c0_2 = arith.constant 0 : index
    %1 = vector.load %arg2[%c0_1, %c0_2] : memref<16x32xf32, #tpu.memory_space<vmem>>, vector<16x32xf32>
    %2 = arith.addf %0, %1 : vector<16x32xf32>
    %cst = arith.constant dense<0.000000e+00> : vector<16xf32>
    %3 = vector.multi_reduction <add>, %2, %cst [1] : vector<16x32xf32> to vector<16xf32>
    %4 = vector.shape_cast %3 : vector<16xf32> to vector<16x1xf32>
    %cst_3 = arith.constant 3.200000e+01 : f32
    %5 = vector.broadcast %cst_3 : f32 to vector<16x1xf32>
    %6 = arith.divf %4, %5 : vector<16x1xf32>
    %7 = vector.broadcast %6 : vector<16x1xf32> to vector<16x32xf32>
    %8 = arith.subf %2, %7 : vector<16x32xf32>
    %9 = arith.mulf %8, %8 : vector<16x32xf32>
    %cst_4 = arith.constant dense<0.000000e+00> : vector<16xf32>
    %10 = vector.multi_reduction <add>, %9, %cst_4 [1] : vector<16x32xf32> to vector<16xf32>
    %11 = vector.shape_cast %10 : vector<16xf32> to vector<16x1xf32>
    %cst_5 = arith.constant 3.200000e+01 : f32
    %12 = vector.broadcast %cst_5 : f32 to vector<16x1xf32>
    %13 = arith.divf %11, %12 : vector<16x1xf32>
    %14 = vector.broadcast %6 : vector<16x1xf32> to vector<16x32xf32>
    %15 = arith.subf %2, %14 : vector<16x32xf32>
    %cst_6 = arith.constant 9.99999996E-13 : f32
    %16 = vector.broadcast %cst_6 : f32 to vector<16x1xf32>
    %17 = arith.addf %13, %16 : vector<16x1xf32>
    %18 = math.rsqrt %17 : vector<16x1xf32>
    %19 = vector.broadcast %18 : vector<16x1xf32> to vector<16x32xf32>
    %20 = arith.mulf %15, %19 : vector<16x32xf32>
    %c0_7 = arith.constant 0 : index
    %c0_8 = arith.constant 0 : index
    %21 = vector.load %arg3[%c0_7, %c0_8] : memref<1x32xf32, #tpu.memory_space<vmem>>, vector<1x32xf32>
    %22 = vector.broadcast %21 : vector<1x32xf32> to vector<16x32xf32>
    %23 = arith.mulf %20, %22 : vector<16x32xf32>
    %c0_9 = arith.constant 0 : index
    %c0_10 = arith.constant 0 : index
    %24 = vector.load %arg4[%c0_9, %c0_10] : memref<1x32xf32, #tpu.memory_space<vmem>>, vector<1x32xf32>
    %25 = vector.broadcast %24 : vector<1x32xf32> to vector<16x32xf32>
    %26 = arith.addf %23, %25 : vector<16x32xf32>
    %c0_11 = arith.constant 0 : index
    %c0_12 = arith.constant 0 : index
    %27 = vector.load %arg5[%c0_11, %c0_12] : memref<16x32xf32, #tpu.memory_space<vmem>>, vector<16x32xf32>
    tpu.vector_store %arg5[%c0_11, %c0_12], %26 {strides = array<i32>} : memref<16x32xf32, #tpu.memory_space<vmem>>, vector<16x32xf32>,
    return
  }
  func.func @transform_0(%arg0: i32) -> (i32, i32) {
    %c0_i32 = arith.constant 0 : i32
    %c0_i32_0 = arith.constant 0 : i32
    return %arg0, %c0_i32 : i32, i32
  }
  func.func @transform_1(%arg0: i32) -> (i32, i32) {
    %c0_i32 = arith.constant 0 : i32
    %c0_i32_0 = arith.constant 0 : i32
    return %arg0, %c0_i32 : i32, i32
  }
  func.func @transform_2(%arg0: i32) -> (i32, i32) {
    %c0_i32 = arith.constant 0 : i32
    %c0_i32_0 = arith.constant 0 : i32
    %c0_i32_1 = arith.constant 0 : i32
    return %c0_i32, %c0_i32_0 : i32, i32
  }
  func.func @transform_3(%arg0: i32) -> (i32, i32) {
    %c0_i32 = arith.constant 0 : i32
    %c0_i32_0 = arith.constant 0 : i32
    %c0_i32_1 = arith.constant 0 : i32
    return %c0_i32, %c0_i32_0 : i32, i32
  }
  func.func @transform_4(%arg0: i32) -> (i32, i32) {
    %c0_i32 = arith.constant 0 : i32
    %c0_i32_0 = arith.constant 0 : i32
    return %arg0, %c0_i32 : i32, i32
  }
}

</mosaic_0001>

<bundles_post_ra>
// kernel: tpu_custom_call.1
= control target key start
LH: loop header
LB: loop body
LE: loop exit
PB: predicated region body
PF: predicated region fallthrough
CT: control target
= control target key end

     0   :  { %9 = vsyncpa [#allocation3], 0  ;;  %s288_s0 = inlined_call_operand.hbm [shape: f32[16,32], index: 0, kind: input, shape index: {}]   ;;  %s289_s1 = inlined_call_operand.hbm [shape: f32[16,32], index: 1, kind: input, shape index: {}]   ;;  %s290_s2 = inlined_call_operand.vmem [shape: f32[1,32], index: 2, kind: input, shape index: {}]   ;;  %s291_s3 = inlined_call_operand.vmem [shape: f32[1,32], index: 3, kind: input, shape index: {}]   ;;  %s292_s4 = inlined_call_operand.hbm [shape: f32[16,32], index: 4, kind: output, shape index: {}]  }
   0x1   :  { %10 = vsyncpa [#allocation6], 0 }
   0x2   :  { %11 = vsyncpa [#allocation4], 0  ;;  %s201_s15 = smov [#allocation2]   ;;  %s129_s19 = scalar_lea.hbm %s288_s0, 256 }
   0x3   :  { %s17_s16 = sshll.u32 %s201_s15, 4  ;;  %p130_p0 = scmp.ne.s32.totalorder %s288_s0, %s129_s19  ;;  %s18_s16 = int_to_ptr.vmem [resolvable:$true] %s17_s16 }
   0x4   :  { %p133_p1 = scmp.lt.u32.totalorder %s129_s19, %s288_s0 }
   0x6   :  { %p135_p2 = pnand %p133_p1, %p130_p0 }
   0x8   :  { %138 = shalt.err (!%p135_p2)
}
   0x9   :  { %s139_s24 = scalar_lea.vmem %s18_s16, 256  ;;  %p144_p4 = scmp.lt.s32.totalorder %s18_s16, %s18_s16 }
   0xa   :  { %p140_p3 = scmp.ne.s32.totalorder %s18_s16, %s139_s24  ;;  %p145_p5 = scmp.lt.s32.totalorder %s139_s24, %s139_s24 }
   0xc   :  { %p146_p6 = por %p145_p5, %p144_p4 }
   0xe   :  { %p147_p7 = pnand %p146_p6, %p140_p3 }
  0x10   :  { %150 = shalt.err (!%p147_p7)
}
  0x11   :  { %s202_s25 = smov 128   ;;  %s203_s26 = smov 8  }
  0x12   :  { %23 = dma.hbm_to_vmem [thread:$0]  %s288_s0, 256, %s18_s16, [#allocation3], %s202_s25, %s202_s25, %s203_s26  }
  0x13   :  { %s204_s29 = smov [#allocation5]   ;;  %s151_s7 = scalar_lea.hbm %s289_s1, 256 }
  0x14   :  { %s29_s30 = sshll.u32 %s204_s29, 4  ;;  %p152_p8 = scmp.ne.s32.totalorder %s289_s1, %s151_s7  ;;  %s30_s30 = int_to_ptr.vmem [resolvable:$true] %s29_s30 }
  0x15   :  { %p155_p9 = scmp.lt.u32.totalorder %s151_s7, %s289_s1 }
  0x17   :  { %p157_p10 = pnand %p155_p9, %p152_p8 }
  0x19   :  { %160 = shalt.err (!%p157_p10)
}
  0x1a   :  { %s161_s12 = scalar_lea.vmem %s30_s30, 256  ;;  %p166_p12 = scmp.lt.s32.totalorder %s30_s30, %s30_s30 }
  0x1b   :  { %p162_p11 = scmp.ne.s32.totalorder %s30_s30, %s161_s12  ;;  %p167_p13 = scmp.lt.s32.totalorder %s161_s12, %s161_s12 }
  0x1d   :  { %p168_p0 = por %p167_p13, %p166_p12 }
  0x1f   :  { %p169_p1 = pnand %p168_p0, %p162_p11 }
  0x21   :  { %172 = shalt.err (!%p169_p1)
}
  0x22   :  { %35 = dma.hbm_to_vmem [thread:$0]  %s289_s1, 256, %s30_s30, [#allocation6], %s202_s25, %s202_s25, %s203_s26  }
  0x23   :  { %195 = dma.done.wait [#allocation3], 256  }
  0x24   :  { %196 = vsyncadd [#allocation3], 4294967040 }
  0x25   :  { %197 = dma.done.wait [#allocation6], 256  }
  0x26   :  { %198 = vsyncadd [#allocation6], 4294967040  ;;  %v46_v0 = vld [vmem:[#allocation2] sm:$0xff]  ;;  %v48_v1 = vld [vmem:[#allocation5] sm:$0xff]  ;;  %vm52_vm0 = vcmask 261120   ;;  %s205_s17 = smov [#allocation7]  }
  0x27   :  { %v47_v2 = vld [vmem:[#allocation2 + $0x8] sm:$0xff]  ;;  %v50_v3 = vadd.f32 %v48_v1, %v46_v0  ;;  %v49_v4 = vld [vmem:[#allocation5 + $0x8] sm:$0xff]  ;;  %v118_v25 = vld [vmem:[%s290_s2] ss:$0 sm:$0xff]  ;;  %s105_s18 = sshll.u32 %s205_s17, 4  ;;  %s106_s18 = int_to_ptr.vmem [resolvable:$true] %s105_s18 }
  0x28   :  { %v51_v5 = vadd.f32 %v49_v4, %v47_v2  ;;  %v119_v27 = vld [vmem:[%s291_s3] ss:$0 sm:$0xff]  ;;  %s173_s19 = scalar_lea.vmem %s106_s18, 256  ;;  %p178_p3 = scmp.lt.s32.totalorder %s106_s18, %s106_s18 }
  0x29   :  { %v53_v6 = vsel %vm52_vm0, %v50_v3, 0.0  ;;  %p174_p2 = scmp.ne.s32.totalorder %s106_s18, %s173_s19  ;;  %p179_p4 = scmp.lt.s32.totalorder %s173_s19, %s173_s19 }
  0x2a   :  { %54 = vadd.xlane.f32.xlu0 %v53_v6  ;;  %v56_v7 = vsel %vm52_vm0, %v51_v5, 0.0 }
  0x2b   :  { %p180_p5 = por %p179_p4, %p178_p3 }
  0x2d   :  { %p181_p6 = pnand %p180_p5, %p174_p2 }
  0x2e   :  { %57 = vadd.xlane.f32.xlu0 %v56_v7 }
  0xb7   :  { %v55_v8 = vpop.xlane.xlu0 %54 }
  0xb8   :  { %v60_v9 = vmul.f32 0.03125, %v55_v8 }
  0xba   :  { %v62_v10 = vsub.f32 %v50_v3, %v60_v9 }
  0xbb   :  { %v58_v11 = vpop.xlane.xlu0 %57 }
  0xbc   :  { %v61_v12 = vmul.f32 0.03125, %v58_v11  ;;  %v64_v13 = vmul.f32 %v62_v10, %v62_v10 }
  0xbe   :  { %v63_v14 = vsub.f32 %v51_v5, %v61_v12  ;;  %v66_v15 = vsel %vm52_vm0, %v64_v13, 0.0 }
  0xbf   :  { %67 = vadd.xlane.f32.xlu1 %v66_v15 }
  0xc0   :  { %v65_v16 = vmul.f32 %v63_v14, %v63_v14 }
  0xc2   :  { %v69_v17 = vsel %vm52_vm0, %v65_v16, 0.0 }
  0xc3   :  { %70 = vadd.xlane.f32.xlu1 %v69_v17 }
 0x14c   :  { %v68_v18 = vpop.xlane.xlu1 %67 }
 0x14d   :  { %v72_v19 = vmul.f32 0.03125, %v68_v18 }
 0x14f   :  { %v74_v20 = vadd.f32 1e-12, %v72_v19 }
 0x150   :  { %v71_v21 = vpop.xlane.xlu1 %70 }
 0x151   :  { %125 = vrsqrt.f32 %v74_v20  ;;  %v73_v22 = vmul.f32 0.03125, %v71_v21 }
 0x153   :  { %v75_v23 = vadd.f32 1e-12, %v73_v22 }
 0x155   :  { %127 = vrsqrt.f32 %v75_v23 }
 0x15b   :  { %v126_v24 = vpop.eup %125 }
 0x15c   :  { %v78_v26 = vmul.f32 %v126_v24, %v62_v10 }
 0x15e   :  { %v87_v28 = vmul.f32 %v118_v25, %v78_v26 }
 0x15f   :  { %v128_v29 = vpop.eup %127 }
 0x160   :  { %v79_v30 = vmul.f32 %v128_v29, %v63_v14  ;;  %v96_v31 = vadd.f32 %v119_v27, %v87_v28 }
 0x162   :  { %v88_v32 = vmul.f32 %v118_v25, %v79_v30  ;;  %98 = vst.msk [vmem:[#allocation7] sm:$0xff] %vm52_vm0, %v96_v31 }
 0x164   :  { %v97_v33 = vadd.f32 %v119_v27, %v88_v32 }
 0x166   :  { %99 = vst.msk [vmem:[#allocation7 + $0x8] sm:$0xff] %vm52_vm0, %v97_v33 }
 0x167   :  { %184 = shalt.err (!%p181_p6)
}
 0x168   :  { %s185_s20 = scalar_lea.hbm %s292_s4, 256 }
 0x169   :  { %p186_p7 = scmp.ne.s32.totalorder %s292_s4, %s185_s20  ;;  %p189_p8 = scmp.lt.u32.totalorder %s185_s20, %s292_s4 }
 0x16b   :  { %p191_p9 = pnand %p189_p8, %p186_p7 }
 0x16d   :  { %194 = shalt.err (!%p191_p9)
}
 0x16e   :  { %111 = dma.vmem_to_hbm [thread:$0]  %s106_s18, 256, %s292_s4, [#allocation4], %s202_s25, %s202_s25, %s203_s26  }
 0x16f   :  { %199 = dma.done.wait [#allocation4], 256  }
 0x170   :  { %200 = vsyncadd [#allocation4], 4294967040 }
 0x171   :  { %115 = vsyncpa [#allocation3], 1 }
 0x172   :  { %116 = vsyncpa [#allocation6], 1 }
 0x173   :  { %117 = vsyncpa [#allocation4], 1 }

</bundles_post_ra>
